<compile_context>
chip_gen: v6e
topology: v6e:2x2x1
jax: 0.10.0
libtpu: 0.0.40
codegen_flags: <defaults>
</compile_context>

<pallas_src>
import jax
import jax.numpy as jnp
from jax.experimental import pallas as pl
from jax.experimental.pallas import tpu as pltpu

# Raise scoped VMEM above the 16/32 MiB defaults while staying under v7x's 64 MiB.
VMEM_LIMIT_BYTES = 48 * 1024 * 1024


def _round_up(x, m):
    return (x + m - 1) // m * m


# ----------------------------------------------------------------------------
# Capability probe: single-buffered constant-weight BlockSpecs.
# ----------------------------------------------------------------------------
_SINGLE_BUFFER_OK = None


def _single_buffer_supported():
    """Probe once whether pipeline_mode=pl.Buffered(1) lowers on this build."""
    global _SINGLE_BUFFER_OK
    if _SINGLE_BUFFER_OK is not None:
        return _SINGLE_BUFFER_OK
    try:
        def k(x_ref, w_ref, o_ref):
            o_ref[...] = x_ref[...] + w_ref[...]

        f = pl.pallas_call(
            k,
            out_shape=jax.ShapeDtypeStruct((16, 128), jnp.float32),
            grid_spec=pltpu.PrefetchScalarGridSpec(
                num_scalar_prefetch=0,
                grid=(2,),
                in_specs=[
                    pl.BlockSpec((8, 128), lambda i: (i, 0)),
                    pl.BlockSpec((8, 128), lambda i: (0, 0),
                                 pipeline_mode=pl.Buffered(1)),
                ],
                out_specs=pl.BlockSpec((8, 128), lambda i: (i, 0)),
            ),
        )
        jax.block_until_ready(
            f(jnp.zeros((16, 128), jnp.float32), jnp.zeros((8, 128), jnp.float32)))
        _SINGLE_BUFFER_OK = True
    except Exception:
        _SINGLE_BUFFER_OK = False
    return _SINGLE_BUFFER_OK


def _const_spec(shape, index_map):
    """BlockSpec for an operand whose block index is constant across the grid:
    single-buffer it (there is no re-DMA to hide), if supported."""
    if _single_buffer_supported():
        return pl.BlockSpec(shape, index_map, pipeline_mode=pl.Buffered(1))
    return pl.BlockSpec(shape, index_map)


# ----------------------------------------------------------------------------
# Fused linear kernel:  y = sum_i x_i @ w_i + b   (bf16 operands, fp32 accumulate).
# Used for (a) the hoisted LSTM input projection over all T*Bp rows (consuming
# out_f / out_r of the previous layer as two separate accumulated matmuls — no
# concat materialization) and (b) the final embedding.
# Rows padded to a multiple of 8, output columns tiled by 256 (128-aligned),
# sliced back outside the kernel.
# ----------------------------------------------------------------------------
def _make_linear_kernel(n_in):
    def kernel(*refs):
        x_refs = refs[:n_in]
        w_refs = refs[n_in:2 * n_in]
        b_ref = refs[2 * n_in]
        o_ref = refs[2 * n_in + 1]
        acc = jnp.dot(x_refs[0][...], w_refs[0][...],
                      preferred_element_type=jnp.float32)
        for k in range(1, n_in):
            acc = acc + jnp.dot(x_refs[k][...], w_refs[k][...],
                                preferred_element_type=jnp.float32)
        o_ref[...] = (acc + b_ref[...]).astype(o_ref.dtype)
    return kernel


def fused_linear(xs, weights, bias, *, out_dtype=jnp.float32,
                 block_rows=512, block_cols=256):
    """sum_i xs[i] @ weights[i].T + bias  as one tiled Pallas matmul.

    xs[i]: (N, Din_i);  weights[i]: (Dout, Din_i);  bias: (Dout,)  ->  (N, Dout)."""
    n_in = len(xs)
    N = xs[0].shape[0]
    Dout = weights[0].shape[0]

    Dout_p = _round_up(Dout, 128)
    tn = min(block_cols, Dout_p)
    Dout_p = _round_up(Dout_p, tn)
    tm = min(block_rows, _round_up(N, 8))
    N_p = _round_up(N, tm)
    n_row, n_col = N_p // tm, Dout_p // tn

    xs_p, w_ts = [], []
    for x, w in zip(xs, weights):
        Din = x.shape[1]
        x_p = jnp.zeros((N_p, Din), jnp.bfloat16).at[:N].set(x.astype(jnp.bfloat16))
        w_t = jnp.zeros((Din, Dout_p), jnp.float32).at[:, :Dout].set(
            jnp.transpose(w).astype(jnp.float32)).astype(jnp.bfloat16)
        xs_p.append(x_p)
        w_ts.append(w_t)
    b_p = jnp.zeros((1, Dout_p), jnp.float32).at[:, :Dout].set(
        bias.astype(jnp.float32).reshape(1, Dout))

    x_specs = [pl.BlockSpec((tm, x.shape[1]), lambda i, j: (i, 0)) for x in xs_p]
    if n_col == 1:
        # Column-constant weights/bias -> single-buffer them.
        w_specs = [_const_spec((w.shape[0], tn), lambda i, j: (0, 0)) for w in w_ts]
        b_spec = _const_spec((1, tn), lambda i, j: (0, 0))
    else:
        w_specs = [pl.BlockSpec((w.shape[0], tn), lambda i, j: (0, j)) for w in w_ts]
        b_spec = pl.BlockSpec((1, tn), lambda i, j: (0, j))

    out = pl.pallas_call(
        _make_linear_kernel(n_in),
        out_shape=jax.ShapeDtypeStruct((N_p, Dout_p), out_dtype),
        grid_spec=pltpu.PrefetchScalarGridSpec(
            num_scalar_prefetch=0,
            grid=(n_row, n_col),
            in_specs=x_specs + w_specs + [b_spec],
            out_specs=pl.BlockSpec((tm, tn), lambda i, j: (i, j)),
        ),
        compiler_params=pltpu.CompilerParams(
            dimension_semantics=("parallel", "parallel"),
            vmem_limit_bytes=VMEM_LIMIT_BYTES),
    )(*xs_p, *w_ts, b_p)
    return out[:N, :Dout]


# ----------------------------------------------------------------------------
# Fused bidirectional LSTM recurrence.  One grid step = one CHUNK of time steps
# for BOTH directions.  gates_x (hoisted input projection, bf16) is streamed in;
# only h @ W_hh (bf16 weights, fp32 accumulate) runs per step.  Forward processes
# chunk c (rows 0..chunk-1), reverse processes chunk nc-1-c backwards, so both
# states advance monotonically across the sequential grid.
# Gate layout inside each direction's 4H block: [i, f, o, g]  (one sigmoid over
# the contiguous first 3H lanes).
# ----------------------------------------------------------------------------
def _bilstm_chunk_kernel(gxf_ref, gxr_ref, whhf_ref, whhr_ref,
                         outf_ref, outr_ref,
                         hf_scr, cf_scr, hr_scr, cr_scr):
    @pl.when(pl.program_id(0) == 0)
    def _():
        hf_scr[...] = jnp.zeros_like(hf_scr)
        cf_scr[...] = jnp.zeros_like(cf_scr)
        hr_scr[...] = jnp.zeros_like(hr_scr)
        cr_scr[...] = jnp.zeros_like(cr_scr)

    H = hf_scr.shape[1]
    chunk = gxf_ref.shape[0]

    def lstm_cell(gates, c_prev):
        sig = jax.nn.sigmoid(gates[:, 0:3 * H])      # one EUP region for i, f, o
        i = sig[:, 0:H]
        f = sig[:, H:2 * H]
        o = sig[:, 2 * H:3 * H]
        g = jnp.tanh(gates[:, 3 * H:4 * H])
        c = f * c_prev + i * g
        h = o * jnp.tanh(c)
        return h, c

    def step(j, carry):
        # ---- forward direction: local time index j ----
        g_f = gxf_ref[j].astype(jnp.float32) + jnp.dot(
            hf_scr[...].astype(jnp.bfloat16), whhf_ref[...],
            preferred_element_type=jnp.float32)
        h_f, c_f = lstm_cell(g_f, cf_scr[...])
        hf_scr[...] = h_f
        cf_scr[...] = c_f
        outf_ref[j] = h_f.astype(outf_ref.dtype)

        # ---- reverse direction: local row chunk-1-j of the reversed chunk ----
        jr = chunk - 1 - j
        g_r = gxr_ref[jr].astype(jnp.float32) + jnp.dot(
            hr_scr[...].astype(jnp.bfloat16), whhr_ref[...],
            preferred_element_type=jnp.float32)
        h_r, c_r = lstm_cell(g_r, cr_scr[...])
        hr_scr[...] = h_r
        cr_scr[...] = c_r
        outr_ref[jr] = h_r.astype(outr_ref.dtype)
        return carry

    jax.lax.fori_loop(0, chunk, step, 0, unroll=min(chunk, 8))


def bilstm_layer(gates_x, w_hh_f, w_hh_r, *, max_chunk=16):
    """gates_x: (T, Bp, 8H) bf16 (fwd gates in [:4H], rev gates in [4H:], each in
    [i,f,o,g] order).  Returns (out_f, out_r), each (Tp, Bp, H) bf16 written at
    original time positions (Tp = T padded up to a chunk multiple; padded rows
    have zero gates so the reverse state stays exactly zero through them)."""
    T, Bp, H8 = gates_x.shape
    H = H8 // 8
    chunk = min(T, max_chunk)
    Tp = _round_up(T, chunk)
    nc = Tp // chunk
    if Tp != T:
        gates_x = jnp.zeros((Tp, Bp, H8), gates_x.dtype).at[:T].set(gates_x)

    whh_f_t = jnp.transpose(w_hh_f).astype(jnp.bfloat16)   # (H, 4H)
    whh_r_t = jnp.transpose(w_hh_r).astype(jnp.bfloat16)   # (H, 4H)

    out_f, out_r = pl.pallas_call(
        _bilstm_chunk_kernel,
        out_shape=(jax.ShapeDtypeStruct((Tp, Bp, H), jnp.bfloat16),
                   jax.ShapeDtypeStruct((Tp, Bp, H), jnp.bfloat16)),
        grid_spec=pltpu.PrefetchScalarGridSpec(
            num_scalar_prefetch=0,
            grid=(nc,),
            in_specs=[
                # forward gates: chunk c, columns [0:4H]
                pl.BlockSpec((chunk, Bp, 4 * H), lambda c: (c, 0, 0)),
                # reverse gates: chunk nc-1-c, columns [4H:8H]
                pl.BlockSpec((chunk, Bp, 4 * H), lambda c: (nc - 1 - c, 0, 1)),
                # constant recurrence weights: single-buffered
                _const_spec((H, 4 * H), lambda c: (0, 0)),
                _const_spec((H, 4 * H), lambda c: (0, 0)),
            ],
            out_specs=[
                pl.BlockSpec((chunk, Bp, H), lambda c: (c, 0, 0)),
                pl.BlockSpec((chunk, Bp, H), lambda c: (nc - 1 - c, 0, 0)),
            ],
            scratch_shapes=[pltpu.VMEM((Bp, H), jnp.float32)] * 4,
        ),
        compiler_params=pltpu.CompilerParams(
            dimension_semantics=("arbitrary",),
            vmem_limit_bytes=VMEM_LIMIT_BYTES),
    )(gates_x, gates_x, whh_f_t, whh_r_t)
    return out_f, out_r


# ----------------------------------------------------------------------------
# Full forward: LSTM stack + embedding + the reference's (exact) reshapes.
# ----------------------------------------------------------------------------
def _reorder_gates(p, H):
    """PyTorch LSTM gate order [i, f, g, o] -> kernel order [i, f, o, g]."""
    return jnp.concatenate([p[0 * H:2 * H], p[3 * H:4 * H], p[2 * H:3 * H]], axis=0)


def bidirectional_gru_forward(inp, params):
    """inp: (B, T, nIn) batch_first (like the PyTorch module). Returns (T, B, nOut)."""
    B, T, D0 = inp.shape
    Bp = _round_up(B, 8)                                    # pad batch to 8 sublanes
    x0 = jnp.zeros((Bp, T, D0), jnp.float32).at[:B].set(inp.astype(jnp.float32))
    x0 = jnp.transpose(x0, (1, 0, 2))                       # (T, Bp, D0) time-major

    xs = [x0.reshape(T * Bp, D0)]
    out_f = out_r = None
    H = None
    for p in params["lstm_layers"]:
        H = p["w_hh_f"].shape[1]
        # Hoisted input projection for BOTH directions, gate-reordered, bf16 output.
        w_cat = jnp.concatenate([_reorder_gates(p["w_ih_f"], H),
                                 _reorder_gates(p["w_ih_r"], H)], axis=0)   # (8H, Din)
        b_cat = jnp.concatenate([_reorder_gates(p["b_ih_f"] + p["b_hh_f"], H),
                                 _reorder_gates(p["b_ih_r"] + p["b_hh_r"], H)], axis=0)
        if len(xs) == 1:
            weights = [w_cat]
        else:
            # Consume out_f / out_r separately -> no (T,Bp,2H) concat materialization.
            weights = [w_cat[:, :H], w_cat[:, H:]]
        gx = fused_linear(xs, weights, b_cat, out_dtype=jnp.bfloat16)
        gx = gx.reshape(T, Bp, 8 * H)                                       # (T,Bp,8H)

        out_f, out_r = bilstm_layer(gx, _reorder_gates(p["w_hh_f"], H),
                                    _reorder_gates(p["w_hh_r"], H))
        out_f, out_r = out_f[:T], out_r[:T]                 # drop time padding
        xs = [out_f.reshape(T * Bp, H), out_r.reshape(T * Bp, H)]

    # Final embedding on the (B, T) row ordering used by the reference reshape,
    # again consuming out_f / out_r separately.
    f_bt = jnp.transpose(out_f, (1, 0, 2))[:B].reshape(B * T, H)
    r_bt = jnp.transpose(out_r, (1, 0, 2))[:B].reshape(B * T, H)
    emb_w, emb_b = params["emb_w"], params["emb_b"]
    out = fused_linear([f_bt, r_bt], [emb_w[:, :H], emb_w[:, H:]], emb_b,
                       out_dtype=jnp.float32)
    return out.reshape(T, B, -1)                            # (T, B, nOut)


# ----------------------------------------------------------------------------
# Pure-JAX fp32 reference (lax.scan LSTM, PyTorch gate order) for a sanity check.
# ----------------------------------------------------------------------------
def _lstm_layer_ref(x_tm, w_ih, w_hh, b_ih, b_hh, reverse):
    T, B, D = x_tm.shape
    H = w_hh.shape[1]
    xs = x_tm[::-1] if reverse else x_tm

    def step(carry, xt):
        h, c = carry
        gates = xt @ w_ih.T + h @ w_hh.T + b_ih + b_hh
        i = jax.nn.sigmoid(gates[:, 0 * H:1 * H])
        f = jax.nn.sigmoid(gates[:, 1 * H:2 * H])
        g = jnp.tanh(gates[:, 2 * H:3 * H])
        o = jax.nn.sigmoid(gates[:, 3 * H:4 * H])
        c = f * c + i * g
        h = o * jnp.tanh(c)
        return (h, c), h

    init = (jnp.zeros((B, H), jnp.float32), jnp.zeros((B, H), jnp.float32))
    _, hs = jax.lax.scan(step, init, xs)
    return hs[::-1] if reverse else hs


def forward_ref(inp, params):
    B, T, _ = inp.shape
    x = jnp.transpose(inp, (1, 0, 2))
    for p in params["lstm_layers"]:
        h_f = _lstm_layer_ref(x, p["w_ih_f"], p["w_hh_f"], p["b_ih_f"], p["b_hh_f"], False)
        h_r = _lstm_layer_ref(x, p["w_ih_r"], p["w_hh_r"], p["b_ih_r"], p["b_hh_r"], True)
        x = jnp.concatenate([h_f, h_r], axis=-1)
    recurrent = jnp.transpose(x, (1, 0, 2))
    Bc, Tc, Hc = recurrent.shape
    t_rec = recurrent.reshape(Tc * Bc, Hc)
    out = t_rec @ params["emb_w"].T + params["emb_b"]
    return out.reshape(Tc, Bc, -1)


# ----------------------------------------------------------------------------
# Deterministic parameter init (matches PyTorch LSTM/Linear init distribution).
# ----------------------------------------------------------------------------
def init_params(key, n_in, n_hidden, n_out, n_layers):
    k_lstm = 1.0 / jnp.sqrt(n_hidden)
    params = {"lstm_layers": []}
    for layer in range(n_layers):
        in_size = n_in if layer == 0 else 2 * n_hidden
        layer_p = {}
        for d, suffix in ((0, "f"), (1, "r")):
            key, k1, k2, k3, k4 = jax.random.split(key, 5)
            layer_p[f"w_ih_{suffix}"] = jax.random.uniform(
                k1, (4 * n_hidden, in_size), jnp.float32, -k_lstm, k_lstm)
            layer_p[f"w_hh_{suffix}"] = jax.random.uniform(
                k2, (4 * n_hidden, n_hidden), jnp.float32, -k_lstm, k_lstm)
            layer_p[f"b_ih_{suffix}"] = jax.random.uniform(
                k3, (4 * n_hidden,), jnp.float32, -k_lstm, k_lstm)
            layer_p[f"b_hh_{suffix}"] = jax.random.uniform(
                k4, (4 * n_hidden,), jnp.float32, -k_lstm, k_lstm)
        params["lstm_layers"].append(layer_p)

    k_lin = 1.0 / jnp.sqrt(2 * n_hidden)
    key, k1, k2 = jax.random.split(key, 3)
    params["emb_w"] = jax.random.uniform(
        k1, (n_out, 2 * n_hidden), jnp.float32, -k_lin, k_lin)
    params["emb_b"] = jax.random.uniform(k2, (n_out,), jnp.float32, -k_lin, k_lin)
    return params


if __name__ == "__main__":
    B, T = 2, 8
    n_in, n_hidden, n_out, n_layers = 16, 32, 8, 2

    key = jax.random.PRNGKey(0)
    k_inp, k_par = jax.random.split(key)
    inp = jax.random.normal(k_inp, (B, T, n_in), jnp.float32)
    params = init_params(k_par, n_in, n_hidden, n_out, n_layers)

    out = bidirectional_gru_forward(inp, params)
    out = jax.block_until_ready(out)

    ref = jax.block_until_ready(forward_ref(inp, params))
    assert out.shape == (T, B, n_out), out.shape
    assert jnp.allclose(out, ref, rtol=5e-2, atol=5e-2), "mismatch vs reference"

    print("KERNEL_OK")
</pallas_src>

<mosaic_0001>
module attributes {stable_mosaic.version = 11 : i64} {
  func.func @k(%arg0: i32, %arg1: memref<8x128xf32, #tpu.memory_space<vmem>>, %arg2: memref<8x128xf32, #tpu.memory_space<vmem>>, %arg3: memref<8x128xf32, #tpu.memory_space<vmem>>) attributes {dimension_semantics = [#tpu.dimension_semantics<arbitrary>], iteration_bounds = array<i64: 2>, scalar_prefetch = 0 : i64, scratch_operands = 0 : i64, tpu.core_type = #tpu.core_type<tc>, window_params = [{transform_indices = @transform_0, window_bounds = array<i64: 8, 128>}, {pipeline_mode = #tpu.pipeline_mode<synchronous>, transform_indices = @transform_1, window_bounds = array<i64: 8, 128>}, {transform_indices = @transform_2, window_bounds = array<i64: 8, 128>}]} {
    %c0 = arith.constant 0 : index
    %c0_0 = arith.constant 0 : index
    %0 = vector.load %arg1[%c0, %c0_0] : memref<8x128xf32, #tpu.memory_space<vmem>>, vector<8x128xf32>
    %c0_1 = arith.constant 0 : index
    %c0_2 = arith.constant 0 : index
    %1 = vector.load %arg2[%c0_1, %c0_2] : memref<8x128xf32, #tpu.memory_space<vmem>>, vector<8x128xf32>
    %2 = arith.addf %0, %1 : vector<8x128xf32>
    %c0_3 = arith.constant 0 : index
    %c0_4 = arith.constant 0 : index
    %3 = vector.load %arg3[%c0_3, %c0_4] : memref<8x128xf32, #tpu.memory_space<vmem>>, vector<8x128xf32>
    tpu.vector_store %arg3[%c0_3, %c0_4], %2 {strides = array<i32>} : memref<8x128xf32, #tpu.memory_space<vmem>>, vector<8x128xf32>,
    return
  }
  func.func @transform_0(%arg0: i32) -> (i32, i32) {
    %c0_i32 = arith.constant 0 : i32
    %c0_i32_0 = arith.constant 0 : i32
    return %arg0, %c0_i32 : i32, i32
  }
  func.func @transform_1(%arg0: i32) -> (i32, i32) {
    %c0_i32 = arith.constant 0 : i32
    %c0_i32_0 = arith.constant 0 : i32
    %c0_i32_1 = arith.constant 0 : i32
    return %c0_i32, %c0_i32_0 : i32, i32
  }
  func.func @transform_2(%arg0: i32) -> (i32, i32) {
    %c0_i32 = arith.constant 0 : i32
    %c0_i32_0 = arith.constant 0 : i32
    return %arg0, %c0_i32 : i32, i32
  }
}

module attributes {stable_mosaic.version = 11 : i64} {
  func.func @kernel(%arg0: i32, %arg1: i32, %arg2: memref<64x16xbf16, #tpu.memory_space<vmem>>, %arg3: memref<16x256xbf16, #tpu.memory_space<vmem>>, %arg4: memref<1x256xf32, #tpu.memory_space<vmem>>, %arg5: memref<64x256xbf16, #tpu.memory_space<vmem>>) attributes {dimension_semantics = [#tpu.dimension_semantics<parallel>, #tpu.dimension_semantics<parallel>], iteration_bounds = array<i64: 1, 1>, scalar_prefetch = 0 : i64, scratch_operands = 0 : i64, tpu.core_type = #tpu.core_type<tc>, window_params = [{transform_indices = @transform_0, window_bounds = array<i64: 64, 16>}, {pipeline_mode = #tpu.pipeline_mode<synchronous>, transform_indices = @transform_1, window_bounds = array<i64: 16, 256>}, {pipeline_mode = #tpu.pipeline_mode<synchronous>, transform_indices = @transform_2, window_bounds = array<i64: 1, 256>}, {transform_indices = @transform_3, window_bounds = array<i64: 64, 256>}]} {
    %c0 = arith.constant 0 : index
    %c0_0 = arith.constant 0 : index
    %0 = vector.load %arg2[%c0, %c0_0] : memref<64x16xbf16, #tpu.memory_space<vmem>>, vector<64x16xbf16>
    %c0_1 = arith.constant 0 : index
    %c0_2 = arith.constant 0 : index
    %1 = vector.load %arg3[%c0_1, %c0_2] : memref<16x256xbf16, #tpu.memory_space<vmem>>, vector<16x256xbf16>
    %cst = arith.constant dense<0.000000e+00> : vector<64x256xf32>
    %2 = tpu.matmul %0, %1, %cst {dimension_numbers = #tpu.dot_dimension_numbers<[1], [0], [0], [1], [0, 0, 1, 1], [], []>} : vector<64x16xbf16>, vector<16x256xbf16>, vector<64x256xf32> -> vector<64x256xf32>
    %c0_3 = arith.constant 0 : index
    %c0_4 = arith.constant 0 : index
    %3 = vector.load %arg4[%c0_3, %c0_4] : memref<1x256xf32, #tpu.memory_space<vmem>>, vector<1x256xf32>
    %4 = vector.broadcast %3 : vector<1x256xf32> to vector<64x256xf32>
    %5 = arith.addf %2, %4 : vector<64x256xf32>
    %6 = arith.truncf %5 : vector<64x256xf32> to vector<64x256xbf16>
    %c0_5 = arith.constant 0 : index
    %c0_6 = arith.constant 0 : index
    %7 = vector.load %arg5[%c0_5, %c0_6] : memref<64x256xbf16, #tpu.memory_space<vmem>>, vector<64x256xbf16>
    tpu.vector_store %arg5[%c0_5, %c0_6], %6 {strides = array<i32>} : memref<64x256xbf16, #tpu.memory_space<vmem>>, vector<64x256xbf16>,
    return
  }
  func.func @transform_0(%arg0: i32, %arg1: i32) -> (i32, i32) {
    %c0_i32 = arith.constant 0 : i32
    %c0_i32_0 = arith.constant 0 : i32
    return %arg0, %c0_i32 : i32, i32
  }
  func.func @transform_1(%arg0: i32, %arg1: i32) -> (i32, i32) {
    %c0_i32 = arith.constant 0 : i32
    %c0_i32_0 = arith.constant 0 : i32
    %c0_i32_1 = arith.constant 0 : i32
    return %c0_i32, %c0_i32_0 : i32, i32
  }
  func.func @transform_2(%arg0: i32, %arg1: i32) -> (i32, i32) {
    %c0_i32 = arith.constant 0 : i32
    %c0_i32_0 = arith.constant 0 : i32
    %c0_i32_1 = arith.constant 0 : i32
    return %c0_i32, %c0_i32_0 : i32, i32
  }
  func.func @transform_3(%arg0: i32, %arg1: i32) -> (i32, i32) {
    %c0_i32 = arith.constant 0 : i32
    return %arg0, %arg1 : i32, i32
  }
}

</mosaic_0001>

<bundles_post_ra>
// kernel: tpu_custom_call.1
= control target key start
LH: loop header
LB: loop body
LE: loop exit
PB: predicated region body
PF: predicated region fallthrough
CT: control target
= control target key end

     0   :  { %7 = vsyncpa [#allocation3], 0  ;;  %s649_s0 = inlined_call_operand.hbm [shape: f32[16,128], index: 0, kind: input, shape index: {}]   ;;  %s650_s1 = inlined_call_operand.hbm [shape: f32[8,128], index: 1, kind: input, shape index: {}]   ;;  %s651_s2 = inlined_call_operand.hbm [shape: f32[16,128], index: 2, kind: output, shape index: {}]  }
   0x1   :  { %9 = vsyncpa [#allocation3 + $0x1], 0 }
   0x2   :  { %10 = vsyncpa [#allocation6], 0 }
   0x3   :  { %11 = vsyncpa [#allocation4], 0 }
   0x4   :  { %13 = vsyncpa [#allocation4 + $0x1], 0  ;;  %s483_s9 = smov 0   ;;  %s485_s10 = smov 0  }
   0x5   :  { %s487_s11 = smov 0   ;;  %s489_s12 = smov 0  }
   0x6 LB: > { %s504_s13 = sadd.s32 4294967295, %s463_s12   ;;  %s270_s14 = sadd.s32 4294967294, %s463_s12   ;;  %s463_s12 = sphi %s489_s12, %s674_s12   ;;  %s459_s11 = sphi %s487_s11, %s673_s11   ;;  %s455_s10 = sphi %s485_s10, %s672_s10   ;;  %s451_s9 = sphi %s483_s9, %s671_s9  }
   0x7   : > { %p39_p0 = scmp.ne.s32.totalorder %s455_s10, %s451_s9  ;;  %p652_p1 = scmp.eq.s32.totalorder %s504_s13, 0 }
   0x8   : > { %p90_p3 = scmp.eq.s32.totalorder %s270_s14, 1  ;;  %p271_p5 = scmp.ge.s32.totalorder %s463_s12, 1 }
   0x9   : > { %p513_p4 = por %p652_p1, %p39_p0  ;;  %p97_p7 = scmp.lt.s32.totalorder %s463_s12, 3 }
   0xa   : > { %p518_p6 = por %p90_p3, %p39_p0  ;;  %s465_s18 = smov [#allocation5]  }
   0xb   : > { %s656_s15 = scalar_select %p513_p4, 1, 0 }
   0xc   : > { %s657_s16 = scalar_select %p518_p6, 1, 0 }
   0xd   : > { %p523_p8 = pnand %p271_p5, %p97_p7  ;;  %s110_s19 = sshll.u32 %s465_s18, 4  ;;  %s111_s19 = int_to_ptr.vmem [resolvable:$true] %s110_s19 }
   0xe   : > { %s531_s20 = sadd.s32 1, %s463_s12   ;;  %s26_s24 = sadd.s32 1, %s459_s11 }
   0xf   : > { %s658_s17 = scalar_select %p523_p8, 1, 0 }
  0x10   : > { %p292_p10 = pneg %p523_p8  ;;  %s23_s22 = ssub.s32 %s463_s12, %s531_s20 }
  0x11   : > { %p541_p12 = scmp.eq.s32.totalorder %s23_s22, 0  ;;  %p33_p13 = scmp.ne.s32.totalorder %s459_s11, %s455_s10 }
  0x12   : > { %p535_p11 = pnand %p292_p10, %p652_p1  ;;  %s352_s25 = scalar_lea.vmem %s111_s19, 128 }
  0x13   : > { %p353_p3 = scmp.ne.s32.totalorder %s111_s19, %s352_s25  ;;  %p360_p9 = scmp.lt.s32.totalorder %s111_s19, %s111_s19 }
  0x14   : > { %p343_p0 = pneg %p535_p11  ;;  %p361_p2 = scmp.lt.s32.totalorder %s352_s25, %s352_s25 }
  0x16   : > { %p355_p5 = pnand %p353_p3, %p343_p0  ;;  %p362_p10 = por %p361_p2, %p360_p9 }
  0x18   : > { %p356_p7 = pneg %p355_p5 }
  0x1a   : > { %p363_p1 = pnand %p362_p10, %p356_p7 }
  0x1c   : > { %366 = shalt.err (!%p363_p1)
}
  0x1d   : > { %295 = dma.hbm_to_vmem [thread:$0]  (!%p535_p11), %s650_s1, 128, %s111_s19, [#allocation6]  }
  0x1e   : > { %s558_s28 = scalar_select %p541_p12, %s459_s11, %s26_s24  }
  0x1f   : > { %p34_p1 = scmp.eq.s32.totalorder %s463_s12, 0  ;;  %p661_p2 = scmp.eq.s32.totalorder %s504_s13, 1 }
  0x20   : > { %p305_p0 = scmp.lt.s32.totalorder %s463_s12, 2  ;;  %s121_s30 = sand.u32 1, %s459_s11  }
  0x21   : > { %p566_p9 = por %p661_p2, %p33_p13  ;;  %p35_p3 = por %p34_p1, %p33_p13 }
  0x22   : > { %s274_s3 = sshll.u32 %s121_s30, 3  ;;  %s275_s4 = sshll.u32 %s463_s12, 7 }
  0x23   : > { %s662_s29 = scalar_select %p566_p9, 1, 0 }
  0x24   : > { %s579_s7 = scalar_lea.hbm %s649_s0, %s275_s4  ;;  %s125_s8 = scalar_lea.vmem [#allocation2], %s274_s3 }
  0x25   : > { %s132_s14 = sshll.u32 %s125_s8, 4  ;;  %p581_p11 = pnand %p305_p0, %p35_p3  ;;  %s133_s14 = int_to_ptr.vmem [resolvable:$true] %s132_s14 }
  0x26   : > { %s122_s19 = scalar_lea.sflag [#allocation3], %s121_s30  ;;  %s367_s21 = scalar_lea.hbm %s579_s7, 128 }
  0x27   : > { %p368_p12 = scmp.ne.s32.totalorder %s579_s7, %s367_s21  ;;  %p369_p13 = pneg %p581_p11 }
  0x28   : > { %s372_s24 = scalar_lea.hbm %s649_s0, 256  ;;  %p373_p10 = scmp.lt.s32.totalorder %s579_s7, %s649_s0 }
  0x29   : > { %p370_p5 = pnand %p369_p13, %p368_p12  ;;  %p374_p1 = scmp.lt.s32.totalorder %s372_s24, %s367_s21 }
  0x2b   : > { %p371_p7 = pneg %p370_p5  ;;  %p375_p2 = por %p374_p1, %p373_p10 }
  0x2d   : > { %p376_p0 = pnand %p375_p2, %p371_p7 }
  0x2f   : > { %379 = shalt.err (!%p376_p0)
}
  0x30   : > { %s380_s27 = scalar_lea.vmem %s133_s14, 128  ;;  %s466_s30 = smov [#allocation2]  }
  0x31   : > { %p381_p3 = scmp.ne.s32.totalorder %s133_s14, %s380_s27  ;;  %s385_s3 = sshll.u32 %s466_s30, 4  ;;  %s386_s3 = int_to_ptr.vmem [resolvable:$false] %s385_s3 }
  0x32   : > { %s387_s4 = scalar_lea.vmem %s386_s3, 256  ;;  %p388_p12 = scmp.lt.s32.totalorder %s133_s14, %s386_s3 }
  0x33   : > { %p383_p6 = pnand %p381_p3, %p369_p13  ;;  %p389_p5 = scmp.lt.s32.totalorder %s387_s4, %s380_s27 }
  0x35   : > { %p384_p9 = pneg %p383_p6  ;;  %p390_p4 = por %p389_p5, %p388_p12 }
  0x37   : > { %p391_p8 = pnand %p390_p4, %p384_p9 }
  0x39   : > { %394 = shalt.err (!%p391_p8)
}
  0x3a   : > { %299 = dma.hbm_to_vmem [thread:$0]  (!%p581_p11), %s579_s7, 128, %s133_s14, %s122_s19  }
  0x3b   : > { %p664_p7 = scmp.ne.s32.totalorder %s658_s17, 0 }
  0x3c   : > { %s602_s5 = sand.u32 (!%p664_p7), 1, %s455_s10   ;;  %p665_p6 = scmp.ne.s32.totalorder (!%p664_p7), %s656_s15, 0 }
  0x3d   : > { %141 = sbr.rel (%p664_p7) target bundleno = 95 (0x5f), region = 28  ;;  %s277_s6 = sshll.u32 (!%p664_p7), %s602_s5, 3 }
  0x3e   : > { %s144_s8 = scalar_lea.sflag (!%p664_p7), [#allocation3], %s602_s5  ;;  %s147_s21 = scalar_lea.vmem (!%p664_p7), [#allocation2], %s277_s6 }
  0x42   : > { %438 = dma.done.wait (%p665_p6), %s144_s8, 128  }
  0x43   : > { %440 = vsyncadd (%p665_p6), %s144_s8, 4294967168  ;;  %p666_p4 = scmp.eq.s32.totalorder %s504_s13, 0 }
  0x45   : > { %442 = dma.done.wait (%p666_p4), [#allocation6], 128   ;;  %p667_p8 = pmov %p666_p4 }
  0x46   : > { %s171_s17 = scalar_lea.vmem [#allocation7], %s277_s6  ;;  %s281_s14 = sshll.u32 %s504_s13, 7  ;;  %v172_v0 = vld [vmem:[%s147_s21] sm:$0xff]  ;;  %v173_v1 = vld [vmem:[#allocation5] sm:$0xff] }
  0x47   : > { %444 = vsyncadd (%p667_p8), [#allocation6], 4294967168  ;;  %s190_s7 = sshll.u32 %s171_s17, 4  ;;  %v174_v2 = vadd.f32 %v173_v1, %v172_v0  ;;  %s188_s15 = scalar_lea.hbm %s651_s2, %s281_s14  ;;  %s191_s7 = int_to_ptr.vmem [resolvable:$true] %s190_s7 }
  0x48   : > { %s177_s22 = scalar_lea.sflag [#allocation4], %s602_s5  ;;  %s395_s23 = scalar_lea.vmem %s191_s7, 128 }
  0x49   : > { %175 = vst [vmem:[%s171_s17] sm:$0xff] %v174_v2  ;;  %p396_p9 = scmp.ne.s32.totalorder %s191_s7, %s395_s23  ;;  %p668_p11 = scmp.ne.s32.totalorder %s662_s29, 0 }
  0x4a   : > { %s467_s24 = smov [#allocation7]  }
  0x4b   : > { %p397_p13 = pnand %p396_p9, %p668_p11  ;;  %s399_s25 = sshll.u32 %s467_s24, 4  ;;  %s400_s25 = int_to_ptr.vmem [resolvable:$false] %s399_s25 }
  0x4c   : > { %s401_s26 = scalar_lea.vmem %s400_s25, 256  ;;  %p402_p1 = scmp.lt.s32.totalorder %s191_s7, %s400_s25 }
  0x4d   : > { %p398_p10 = pneg %p397_p13  ;;  %p403_p2 = scmp.lt.s32.totalorder %s401_s26, %s395_s23 }
  0x4f   : > { %p404_p0 = por %p403_p2, %p402_p1 }
  0x51   : > { %p405_p3 = pnand %p404_p0, %p398_p10 }
  0x53   : > { %408 = shalt.err (!%p405_p3)
}
  0x54   : > { %s409_s13 = scalar_lea.hbm %s188_s15, 128  ;;  %s413_s3 = scalar_lea.hbm %s651_s2, 256 }
  0x55   : > { %p410_p12 = scmp.ne.s32.totalorder %s188_s15, %s409_s13  ;;  %p414_p6 = scmp.lt.s32.totalorder %s188_s15, %s651_s2 }
  0x56   : > { %p415_p4 = scmp.lt.s32.totalorder %s413_s3, %s409_s13 }
  0x57   : > { %p411_p5 = pnand %p410_p12, %p668_p11 }
  0x58   : > { %p416_p8 = por %p415_p4, %p414_p6 }
  0x59   : > { %p412_p7 = pneg %p411_p5 }
  0x5b   : > { %p417_p9 = pnand %p416_p8, %p412_p7 }
  0x5d   : > { %420 = shalt.err (!%p417_p9)
}
  0x5e   : > { %290 = dma.vmem_to_hbm [thread:$0]  (%p668_p11), %s191_s7, 128, %s188_s15, %s177_s22  }
  0x5f PF: > { %s202_s6 = sand.u32 1, %s451_s9   ;;  %p669_p13 = scmp.ne.s32.totalorder %s657_s16, 0 }
  0x60   : > { %p670_p10 = scmp.ge.s32.totalorder %s463_s12, 2  ;;  %s203_s8 = scalar_lea.sflag [#allocation4], %s202_s6 }
  0x62   : > { %p301_p1 = pnand %p670_p10, %p669_p13 }
  0x64   : > { %p302_p2 = pneg %p301_p1 }
  0x66   : > { %446 = dma.done.wait (%p302_p2), %s203_s8, 128  }
  0x67   : > { %448 = vsyncadd (%p302_p2), %s203_s8, 4294967168  ;;  %p16_p0 = scmp.ge.s32.totalorder %s531_s20, 4   ;;  %s671_s9 = smov %s455_s10 }
  0x68   : > { %s672_s10 = smov %s459_s11  ;;  %s673_s11 = smov %s558_s28 }
  0x69   : > { %s674_s12 = smov %s531_s20  ;;  %18 = sbr.rel (!%p16_p0) target bundleno = 6 (0x6), region = 77 }
  0x6e   :  { %208 = vsyncpa [#allocation3], 1 }
  0x6f   :  { %210 = vsyncpa [#allocation3 + $0x1], 1 }
  0x70   :  { %211 = vsyncpa [#allocation6], 1 }
  0x71   :  { %212 = vsyncpa [#allocation4], 1 }
  0x72   :  { %214 = vsyncpa [#allocation4 + $0x1], 1 }

// kernel: tpu_custom_call.1
= control target key start
LH: loop header
LB: loop body
LE: loop exit
PB: predicated region body
PF: predicated region fallthrough
CT: control target
= control target key end

     0   :  { %v287_v2 = vmov 0   ;;  %vm68_vm0 = vcmask 130048   ;;  %s335_s0 = inlined_call_operand.vmem [shape: bf16[64,16], index: 0, kind: input, shape index: {}]   ;;  %s336_s1 = inlined_call_operand.vmem [shape: bf16[16,256], index: 1, kind: input, shape index: {}]   ;;  %s337_s2 = inlined_call_operand.vmem [shape: f32[1,256], index: 2, kind: input, shape index: {}]   ;;  %s338_s3 = inlined_call_operand.hbm [shape: bf16[64,256], index: 3, kind: output, shape index: {}]  }
   0x1   :  { %v258_v0 = vld [vmem:[%s336_s1 + $0x4] ss:$8 sps:$4 sm:$0xff]   ;;  %v260_v1 = vld [vmem:[%s336_s1] ss:$8 sps:$4 sm:$0xff]   ;;  %113 = vmatprep.mubr.bf16.mxu0 %v287_v2  ;;  %133 = vmatprep.mubr.bf16.mxu1 %v287_v2  ;;  %v262_v4 = vld [vmem:[%s335_s0 + $0x10] sm:$0xff]  }
   0x2   :  { %95 = vmatprep.subr.bf16.mxu0 %v258_v0  ;;  %252 = vmatprep.subr.bf16.mxu1 %v258_v0  ;;  %v261_v3 = vld [vmem:[%s335_s0] sm:$0xff]  }
   0x3   :  { %96 = vmatpush1.bf16.msra.mxu0 %v260_v1  ;;  %253 = vmatpush1.bf16.msra.mxu1 %v260_v1 }
   0x4   :  { %8 = vsyncpa [#allocation3], 0  ;;  %v263_v5 = vld [vmem:[%s335_s0 + $0x8] sm:$0xff]   ;;  %v264_v6 = vld [vmem:[%s335_s0 + $0x18] sm:$0xff]   ;;  %v28_v7 = vlaneseq  ;;  %s288_s0 = smov [#allocation2]  }
   0x5   :  { %v26_v11 = vld [vmem:[%s337_s2] sm:$0x3]  ;;  %s215_s2 = sshll.u32 %s288_s0, 4  ;;  %s216_s2 = int_to_ptr.vmem [resolvable:$true] %s215_s2 }
   0x6   :  { %232 = vmatmul.mubr.msk.bf16.vlgmr.msra.gmra.mxu0 %vm68_vm0, %v261_v3  ;;  %234 = vmatmul.mubr.msk.bf16.vlgmr.msra.gmra.mxu1 %vm68_vm0, %v262_v4  ;;  %v29_v8 = vshrl.u32 %v28_v7, 7  ;;  %s265_s25 = scalar_lea.vmem %s216_s2, 1024  ;;  %p270_p1 = scmp.lt.s32.totalorder %s216_s2, %s216_s2 }
   0x7   :  { %123 = vmatprep.mubr.bf16.mxu0 %v287_v2  ;;  %143 = vmatprep.mubr.bf16.mxu1 %v287_v2  ;;  %p266_p0 = scmp.ne.s32.totalorder %s216_s2, %s265_s25  ;;  %p271_p2 = scmp.lt.s32.totalorder %s265_s25, %s265_s25 }
   0x8   :  { %v30_v9 = vsub.s32 0, %v29_v8  ;;  %v34_v10 = vsub.s32 1, %v29_v8 }
   0x9   :  { %p272_p3 = por %p271_p2, %p270_p1 }
   0xa   :  { %v31_v12 = vrot.slane %v26_v11, %v30_v9  ;;  %v35_v13 = vrot.slane %v26_v11, %v34_v10 }
   0xb   :  { %p273_p4 = pnand %p272_p3, %p266_p0 }
   0xe   :  { %233 = vmatmul.mubr.msk.bf16.gmra.mxu0 %vm68_vm0, %v263_v5  ;;  %235 = vmatmul.mubr.msk.bf16.gmra.mxu1 %vm68_vm0, %v264_v6 }
  0xc6   :  { %v115_v14 = vpop.f32.mrf.mxu0  ;;  %v135_v15 = vpop.f32.mrf.mxu1 }
  0xc7   :  { %v116_v18 = vadd.f32 %v115_v14, %v31_v12  ;;  %v136_v19 = vadd.f32 %v135_v15, %v31_v12 }
  0xc8   :  { %v117_v16 = vpop.f32.mrf.mxu0  ;;  %v137_v17 = vpop.f32.mrf.mxu1 }
  0xc9   :  { %v118_v20 = vadd.f32 %v117_v16, %v35_v13  ;;  %v138_v21 = vadd.f32 %v137_v17, %v35_v13 }
  0xca   :  { %v119_v22 = vpop.f32.mrf.mxu0  ;;  %v139_v23 = vpop.f32.mrf.mxu1 }
  0xcb   :  { %v244_v24 = vpack.c.bf16 %v118_v20, %v116_v18  ;;  %v248_v25 = vpack.c.bf16 %v138_v21, %v136_v19  ;;  %v120_v28 = vadd.f32 %v119_v22, %v31_v12  ;;  %v140_v29 = vadd.f32 %v139_v23, %v31_v12 }
  0xcc   :  { %v121_v26 = vpop.f32.mrf.mxu0  ;;  %v141_v27 = vpop.f32.mrf.mxu1 }
  0xcd   :  { %202 = vst [vmem:[#allocation2] sm:$0xff] %v244_v24  ;;  %206 = vst [vmem:[#allocation2 + $0x20] sm:$0xff] %v248_v25  ;;  %v122_v30 = vadd.f32 %v121_v26, %v35_v13  ;;  %v142_v31 = vadd.f32 %v141_v27, %v35_v13 }
  0xce   :  { %v125_v32 = vpop.f32.mrf.mxu0  ;;  %v145_v33 = vpop.f32.mrf.mxu1 }
  0xcf   :  { %v245_v34 = vpack.c.bf16 %v122_v30, %v120_v28  ;;  %v249_v35 = vpack.c.bf16 %v142_v31, %v140_v29  ;;  %v126_v38 = vadd.f32 %v125_v32, %v31_v12  ;;  %v146_v39 = vadd.f32 %v145_v33, %v31_v12 }
  0xd0   :  { %v127_v36 = vpop.f32.mrf.mxu0  ;;  %v147_v37 = vpop.f32.mrf.mxu1 }
  0xd1   :  { %203 = vst [vmem:[#allocation2 + $0x8] sm:$0xff] %v245_v34  ;;  %207 = vst [vmem:[#allocation2 + $0x28] sm:$0xff] %v249_v35  ;;  %v128_v40 = vadd.f32 %v127_v36, %v35_v13  ;;  %v148_v41 = vadd.f32 %v147_v37, %v35_v13 }
  0xd2   :  { %v129_v42 = vpop.f32.mrf.mxu0  ;;  %v149_v43 = vpop.f32.mrf.mxu1 }
  0xd3   :  { %v246_v44 = vpack.c.bf16 %v128_v40, %v126_v38  ;;  %v250_v45 = vpack.c.bf16 %v148_v41, %v146_v39  ;;  %v130_v48 = vadd.f32 %v129_v42, %v31_v12  ;;  %v150_v49 = vadd.f32 %v149_v43, %v31_v12 }
  0xd4   :  { %v131_v46 = vpop.f32.mrf.mxu0  ;;  %v151_v47 = vpop.f32.mrf.mxu1 }
  0xd5   :  { %204 = vst [vmem:[#allocation2 + $0x10] sm:$0xff] %v246_v44  ;;  %208 = vst [vmem:[#allocation2 + $0x30] sm:$0xff] %v250_v45  ;;  %v132_v50 = vadd.f32 %v131_v46, %v35_v13  ;;  %v152_v51 = vadd.f32 %v151_v47, %v35_v13 }
  0xd7   :  { %v247_v52 = vpack.c.bf16 %v132_v50, %v130_v48  ;;  %v251_v53 = vpack.c.bf16 %v152_v51, %v150_v49 }
  0xd9   :  { %205 = vst [vmem:[#allocation2 + $0x18] sm:$0xff] %v247_v52  ;;  %209 = vst [vmem:[#allocation2 + $0x38] sm:$0xff] %v251_v53 }
  0xda   :  { %276 = shalt.err (!%p273_p4)
}
  0xdb   :  { %s289_s26 = smov 128   ;;  %s290_s27 = smov 8  }
  0xdc   :  { %221 = dma.vmem_to_hbm [thread:$0]  %s216_s2, 1024, %s338_s3, [#allocation3], %s289_s26, %s289_s26, %s290_s27  }
  0xdd   :  { %285 = dma.done.wait [#allocation3], 1024  }
  0xde   :  { %286 = vsyncadd [#allocation3], 4294966272 }
  0xdf   :  { %225 = vsyncpa [#allocation3], 1 }

</bundles_post_ra>
